<compile_context>
chip_gen: v5e
topology: v5e:2x2
jax: 0.10.0
libtpu: 0.0.40
codegen_flags: <defaults>
</compile_context>

<pallas_src>
import jax
import jax.numpy as jnp
from jax.experimental import pallas as pl
from jax.experimental.pallas import tpu as pltpu


def _sparse_arch_kernel(idx_ref, len_ref, tbl_ref, out_ref):
    # idx_ref: (Fb, Bt, L) int32   bag row ids for this feature/batch block
    # len_ref: (Fb, Bt, 1) int32   valid-entry counts per bag
    # tbl_ref: (Fb, Nt, D) f32     current vocab block of each feature's table
    # out_ref: (Bt, Fb*D) f32      pooled output block (resident over vocab axis)
    Fb, Bt, L = idx_ref.shape
    Nt, D = tbl_ref.shape[1], tbl_ref.shape[2]

    n = pl.program_id(2)            # vocab-block index (reduction axis, last)
    v0 = n * Nt                     # first row id covered by this vocab block

    @pl.when(n == 0)
    def _():
        out_ref[...] = jnp.zeros_like(out_ref)

    # Hoisted iotas (JAX does not CSE broadcasts inside the feature loop).
    slot_iota = jax.lax.broadcasted_iota(jnp.int32, (Bt, L), 1)              # (Bt, L)
    vocab_iota = jax.lax.broadcasted_iota(jnp.int32, (Bt, L, Nt), 2) + v0    # (Bt, L, Nt)

    for j in range(Fb):             # Fb is tiny (chosen so Fb*D is one 128-lane slab)
        valid = slot_iota < len_ref[j]                          # (Bt, L) bool
        idx = jnp.where(valid, idx_ref[j], -1)                  # padded slots never match
        one_hot = (idx[:, :, None] == vocab_iota).astype(jnp.float32)  # (Bt, L, Nt)
        counts = jnp.sum(one_hot, axis=1)                       # (Bt, Nt) bag histogram
        pooled = jnp.dot(counts, tbl_ref[j],
                         preferred_element_type=jnp.float32)    # (Bt, D) on the MXU
        out_ref[:, j * D:(j + 1) * D] += pooled                 # static lane offset


def _pick_features_per_step(F, D):
    # Smallest divisor of F whose combined output width is lane-dense (%128).
    for fb in range(1, F + 1):
        if F % fb == 0 and (fb * D) % 128 == 0:
            return fb
    # Fallback (e.g. D=48): masked output stores, still correct.
    return F


def _pick_batch_tile(B):
    if B <= 128:
        return B
    for bt in (128, 64, 32, 16, 8):
        if B % bt == 0:
            return bt
    return B


def _pick_vocab_tile(N):
    # Bound the streamed table block and give the reduction pipeline depth.
    if N <= 2048:
        return N
    for nt in (2048, 1024, 512, 256, 128, 64, 32, 16, 8):
        if N % nt == 0:
            return nt
    return N


def _round_up(x, m):
    return (x + m - 1) // m * m


def sparse_arch_forward(indices, lengths, tables, *,
                        features_per_step=None, batch_tile=None,
                        vocab_tile=None):
    """indices [F,B,L] i32, lengths [F,B] i32, tables [F,N,D] f32 -> [B,F,D] f32."""
    F, B, L = indices.shape
    Ft, N, D = tables.shape
    assert Ft == F, "tables and indices must share the feature axis"

    Fb = features_per_step or _pick_features_per_step(F, D)
    Bt = batch_tile or _pick_batch_tile(B)
    Nt = vocab_tile or _pick_vocab_tile(N)
    assert F % Fb == 0 and B % Bt == 0 and N % Nt == 0
    assert Bt == B or Bt % 8 == 0, "batch tile must be B or a multiple of 8"
    assert Nt == N or Nt % 8 == 0, "vocab tile must be N or a multiple of 8"

    indices = indices.astype(jnp.int32)
    lengths3 = lengths.reshape(F, B, 1).astype(jnp.int32)
    tables = tables.astype(jnp.float32)

    grid = (F // Fb, B // Bt, N // Nt)          # reduction (vocab) axis last

    grid_spec = pltpu.PrefetchScalarGridSpec(
        num_scalar_prefetch=0,
        grid=grid,
        in_specs=[
            pl.BlockSpec((Fb, Bt, L), lambda g, bt, n: (g, bt, 0)),
            pl.BlockSpec((Fb, Bt, 1), lambda g, bt, n: (g, bt, 0)),
            pl.BlockSpec((Fb, Nt, D), lambda g, bt, n: (g, n, 0)),
        ],
        out_specs=pl.BlockSpec((Bt, Fb * D), lambda g, bt, n: (bt, g)),
    )

    # Explicit VMEM budget: double-buffered blocks, padded to (8,128) tiles.
    idx_bytes = Fb * _round_up(Bt, 8) * _round_up(L, 128) * 4
    len_bytes = Fb * _round_up(Bt, 8) * 128 * 4
    tbl_bytes = Fb * _round_up(Nt, 8) * _round_up(D, 128) * 4
    out_bytes = _round_up(Bt, 8) * _round_up(Fb * D, 128) * 4
    needed = 2 * (idx_bytes + len_bytes + tbl_bytes + out_bytes)
    vmem_limit = int(min(48 * 1024 * 1024, max(2 * needed, 16 * 1024 * 1024)))
    assert needed <= vmem_limit, "tile sizes exceed the VMEM budget; shrink tiles"

    # Advisory cost hint so XLA schedules surrounding ops sensibly.
    cost = pl.CostEstimate(
        flops=int(2 * F * B * N * D),                      # counts @ table matmuls
        transcendentals=0,
        bytes_accessed=int(F * N * D * 4 * (B // Bt)       # table re-streamed per batch tile
                           + F * B * L * 4 + F * B * 4 + B * F * D * 4),
    )

    out_flat = pl.pallas_call(
        _sparse_arch_kernel,
        out_shape=jax.ShapeDtypeStruct((B, F * D), jnp.float32),
        grid_spec=grid_spec,
        compiler_params=pltpu.CompilerParams(
            dimension_semantics=("parallel", "parallel", "arbitrary"),
            vmem_limit_bytes=vmem_limit,
        ),
        cost_estimate=cost,
    )(indices, lengths3, tables)

    # Columns are already [f0 | f1 | ...] * D wide: reshape is free, no transpose.
    return out_flat.reshape(B, F, D)


def _reference(indices, lengths, tables):
    F, B, L = indices.shape
    gathered = tables[jnp.arange(F)[:, None, None], indices]            # (F,B,L,D)
    mask = (jnp.arange(L, dtype=jnp.int32)[None, None, :]
            < lengths[:, :, None]).astype(tables.dtype)                 # (F,B,L)
    pooled = jnp.sum(gathered * mask[..., None], axis=2)                # (F,B,D)
    return jnp.transpose(pooled, (1, 0, 2))                             # (B,F,D)


if __name__ == "__main__":
    # Small deterministic EmbeddingBagCollection:
    #   F=4 tables, N=64 rows each, D=64 dim, B=8 batch, L=4 max bag length.
    F, N, D, B, L = 4, 64, 64, 8, 4

    key = jax.random.PRNGKey(0)
    k_tab, k_idx, k_len = jax.random.split(key, 3)

    tables = jax.random.normal(k_tab, (F, N, D), dtype=jnp.float32)
    indices = jax.random.randint(k_idx, (F, B, L), 0, N, dtype=jnp.int32)
    lengths = jax.random.randint(k_len, (F, B), 0, L + 1, dtype=jnp.int32)

    out = sparse_arch_forward(indices, lengths, tables)
    out = jax.block_until_ready(out)

    ref = _reference(indices, lengths, tables)
    assert out.shape == (B, F, D)
    err = float(jnp.max(jnp.abs(out - ref)))
    assert jnp.allclose(out, ref, atol=1e-5, rtol=1e-5), err

    print("KERNEL_OK")
</pallas_src>

<mosaic_0001>
module attributes {stable_mosaic.version = 11 : i64} {
  func.func @_sparse_arch_kernel(%arg0: i32, %arg1: i32, %arg2: i32, %arg3: memref<2x8x4xi32, #tpu.memory_space<vmem>>, %arg4: memref<2x8x1xi32, #tpu.memory_space<vmem>>, %arg5: memref<2x64x64xf32, #tpu.memory_space<vmem>>, %arg6: memref<8x128xf32, #tpu.memory_space<vmem>>) attributes {dimension_semantics = [#tpu.dimension_semantics<parallel>, #tpu.dimension_semantics<parallel>, #tpu.dimension_semantics<arbitrary>], iteration_bounds = array<i64: 2, 1, 1>, scalar_prefetch = 0 : i64, scratch_operands = 0 : i64, tpu.core_type = #tpu.core_type<tc>, window_params = [{transform_indices = @transform_0, window_bounds = array<i64: 2, 8, 4>}, {transform_indices = @transform_1, window_bounds = array<i64: 2, 8, 1>}, {transform_indices = @transform_2, window_bounds = array<i64: 2, 64, 64>}, {transform_indices = @transform_3, window_bounds = array<i64: 8, 128>}]} {
    %c64_i32 = arith.constant 64 : i32
    %0 = arith.muli %arg2, %c64_i32 : i32
    %c0_i32 = arith.constant 0 : i32
    %1 = arith.cmpi eq, %arg2, %c0_i32 : i32
    %2 = arith.extui %1 : i1 to i32
    %c0_i32_0 = arith.constant 0 : i32
    %3 = arith.cmpi ne, %2, %c0_i32_0 : i32
    scf.if %3 {
      %cst_28 = arith.constant 0.000000e+00 : f32
      %48 = vector.broadcast %cst_28 : f32 to vector<8x128xf32>
      %c0_29 = arith.constant 0 : index
      %c0_30 = arith.constant 0 : index
      %49 = vector.load %arg6[%c0_29, %c0_30] : memref<8x128xf32, #tpu.memory_space<vmem>>, vector<8x128xf32>
      tpu.vector_store %arg6[%c0_29, %c0_30], %48 {strides = array<i32>} : memref<8x128xf32, #tpu.memory_space<vmem>>, vector<8x128xf32>,
    } else {
    }
    %4 = tpu.iota {dimensions = array<i32: 1>} : vector<8x4xi32>
    %5 = tpu.iota {dimensions = array<i32: 2>} : vector<8x4x64xi32>
    %6 = vector.broadcast %0 : i32 to vector<8x4x64xi32>
    %7 = arith.addi %5, %6 : vector<8x4x64xi32>
    %c0 = arith.constant 0 : index
    %c0_1 = arith.constant 0 : index
    %c0_2 = arith.constant 0 : index
    %8 = vector.load %arg4[%c0, %c0_1, %c0_2] : memref<2x8x1xi32, #tpu.memory_space<vmem>>, vector<1x8x1xi32>
    %9 = vector.shape_cast %8 : vector<1x8x1xi32> to vector<8x1xi32>
    %10 = vector.broadcast %9 : vector<8x1xi32> to vector<8x4xi32>
    %11 = arith.cmpi slt, %4, %10 : vector<8x4xi32>
    %c0_3 = arith.constant 0 : index
    %c0_4 = arith.constant 0 : index
    %c0_5 = arith.constant 0 : index
    %12 = vector.load %arg3[%c0_3, %c0_4, %c0_5] : memref<2x8x4xi32, #tpu.memory_space<vmem>>, vector<1x8x4xi32>
    %13 = vector.shape_cast %12 : vector<1x8x4xi32> to vector<8x4xi32>
    %c-1_i32 = arith.constant -1 : i32
    %14 = vector.broadcast %c-1_i32 : i32 to vector<8x4xi32>
    %15 = arith.select %11, %13, %14 : vector<8x4xi1>, vector<8x4xi32>
    %16 = vector.shape_cast %15 : vector<8x4xi32> to vector<8x4x1xi32>
    %17 = vector.broadcast %16 : vector<8x4x1xi32> to vector<8x4x64xi32>
    %18 = arith.cmpi eq, %17, %7 : vector<8x4x64xi32>
    %19 = arith.extui %18 : vector<8x4x64xi1> to vector<8x4x64xi32>
    %20 = arith.sitofp %19 : vector<8x4x64xi32> to vector<8x4x64xf32>
    %cst = arith.constant dense<0.000000e+00> : vector<8x64xf32>
    %21 = vector.multi_reduction <add>, %20, %cst [1] : vector<8x4x64xf32> to vector<8x64xf32>
    %c0_6 = arith.constant 0 : index
    %c0_7 = arith.constant 0 : index
    %c0_8 = arith.constant 0 : index
    %22 = vector.load %arg5[%c0_6, %c0_7, %c0_8] : memref<2x64x64xf32, #tpu.memory_space<vmem>>, vector<1x64x64xf32>
    %23 = vector.shape_cast %22 : vector<1x64x64xf32> to vector<64x64xf32>
    %cst_9 = arith.constant dense<0.000000e+00> : vector<8x64xf32>
    %24 = tpu.matmul %21, %23, %cst_9 {dimension_numbers = #tpu.dot_dimension_numbers<[1], [0], [0], [1], [0, 0, 1, 1], [], []>} : vector<8x64xf32>, vector<64x64xf32>, vector<8x64xf32> -> vector<8x64xf32>
    %c0_10 = arith.constant 0 : index
    %c0_11 = arith.constant 0 : index
    %25 = vector.load %arg6[%c0_10, %c0_11] : memref<8x128xf32, #tpu.memory_space<vmem>>, vector<8x64xf32>
    %26 = arith.addf %25, %24 : vector<8x64xf32>
    %c0_12 = arith.constant 0 : index
    %c0_13 = arith.constant 0 : index
    %27 = vector.load %arg6[%c0_12, %c0_13] : memref<8x128xf32, #tpu.memory_space<vmem>>, vector<8x64xf32>
    tpu.vector_store %arg6[%c0_12, %c0_13], %26 {strides = array<i32>} : memref<8x128xf32, #tpu.memory_space<vmem>>, vector<8x64xf32>,
    %c1 = arith.constant 1 : index
    %c0_14 = arith.constant 0 : index
    %c0_15 = arith.constant 0 : index
    %28 = vector.load %arg4[%c1, %c0_14, %c0_15] : memref<2x8x1xi32, #tpu.memory_space<vmem>>, vector<1x8x1xi32>
    %29 = vector.shape_cast %28 : vector<1x8x1xi32> to vector<8x1xi32>
    %30 = vector.broadcast %29 : vector<8x1xi32> to vector<8x4xi32>
    %31 = arith.cmpi slt, %4, %30 : vector<8x4xi32>
    %c1_16 = arith.constant 1 : index
    %c0_17 = arith.constant 0 : index
    %c0_18 = arith.constant 0 : index
    %32 = vector.load %arg3[%c1_16, %c0_17, %c0_18] : memref<2x8x4xi32, #tpu.memory_space<vmem>>, vector<1x8x4xi32>
    %33 = vector.shape_cast %32 : vector<1x8x4xi32> to vector<8x4xi32>
    %c-1_i32_19 = arith.constant -1 : i32
    %34 = vector.broadcast %c-1_i32_19 : i32 to vector<8x4xi32>
    %35 = arith.select %31, %33, %34 : vector<8x4xi1>, vector<8x4xi32>
    %36 = vector.shape_cast %35 : vector<8x4xi32> to vector<8x4x1xi32>
    %37 = vector.broadcast %36 : vector<8x4x1xi32> to vector<8x4x64xi32>
    %38 = arith.cmpi eq, %37, %7 : vector<8x4x64xi32>
    %39 = arith.extui %38 : vector<8x4x64xi1> to vector<8x4x64xi32>
    %40 = arith.sitofp %39 : vector<8x4x64xi32> to vector<8x4x64xf32>
    %cst_20 = arith.constant dense<0.000000e+00> : vector<8x64xf32>
    %41 = vector.multi_reduction <add>, %40, %cst_20 [1] : vector<8x4x64xf32> to vector<8x64xf32>
    %c1_21 = arith.constant 1 : index
    %c0_22 = arith.constant 0 : index
    %c0_23 = arith.constant 0 : index
    %42 = vector.load %arg5[%c1_21, %c0_22, %c0_23] : memref<2x64x64xf32, #tpu.memory_space<vmem>>, vector<1x64x64xf32>
    %43 = vector.shape_cast %42 : vector<1x64x64xf32> to vector<64x64xf32>
    %cst_24 = arith.constant dense<0.000000e+00> : vector<8x64xf32>
    %44 = tpu.matmul %41, %43, %cst_24 {dimension_numbers = #tpu.dot_dimension_numbers<[1], [0], [0], [1], [0, 0, 1, 1], [], []>} : vector<8x64xf32>, vector<64x64xf32>, vector<8x64xf32> -> vector<8x64xf32>
    %c0_25 = arith.constant 0 : index
    %c64 = arith.constant 64 : index
    %45 = vector.load %arg6[%c0_25, %c64] : memref<8x128xf32, #tpu.memory_space<vmem>>, vector<8x64xf32>
    %46 = arith.addf %45, %44 : vector<8x64xf32>
    %c0_26 = arith.constant 0 : index
    %c64_27 = arith.constant 64 : index
    %47 = vector.load %arg6[%c0_26, %c64_27] : memref<8x128xf32, #tpu.memory_space<vmem>>, vector<8x64xf32>
    tpu.vector_store %arg6[%c0_26, %c64_27], %46 {strides = array<i32>} : memref<8x128xf32, #tpu.memory_space<vmem>>, vector<8x64xf32>,
    return
  }
  func.func @transform_0(%arg0: i32, %arg1: i32, %arg2: i32) -> (i32, i32, i32) {
    %c0_i32 = arith.constant 0 : i32
    %c0_i32_0 = arith.constant 0 : i32
    return %arg0, %arg1, %c0_i32 : i32, i32, i32
  }
  func.func @transform_1(%arg0: i32, %arg1: i32, %arg2: i32) -> (i32, i32, i32) {
    %c0_i32 = arith.constant 0 : i32
    %c0_i32_0 = arith.constant 0 : i32
    return %arg0, %arg1, %c0_i32 : i32, i32, i32
  }
  func.func @transform_2(%arg0: i32, %arg1: i32, %arg2: i32) -> (i32, i32, i32) {
    %c0_i32 = arith.constant 0 : i32
    %c0_i32_0 = arith.constant 0 : i32
    return %arg0, %arg2, %c0_i32 : i32, i32, i32
  }
  func.func @transform_3(%arg0: i32, %arg1: i32, %arg2: i32) -> (i32, i32) {
    %c0_i32 = arith.constant 0 : i32
    return %arg1, %arg0 : i32, i32
  }
}

</mosaic_0001>

<bundles_post_ra>
// kernel: tpu_custom_call.1
= control target key start
LH: loop header
LB: loop body
LE: loop exit
PB: predicated region body
PF: predicated region fallthrough
CT: control target
= control target key end

     0   :  { %8 = vsyncpa [#allocation3], 0  ;;  %s1310_s0 = inlined_call_operand.vmem [shape: s32[4,8,4], index: 0, kind: input, shape index: {}]   ;;  %s1311_s1 = inlined_call_operand.vmem [shape: s32[4,8,1], index: 1, kind: input, shape index: {}]   ;;  %s1312_s2 = inlined_call_operand.hbm [shape: f32[4,64,64], index: 2, kind: input, shape index: {}]   ;;  %s1313_s3 = inlined_call_operand.hbm [shape: f32[8,256], index: 3, kind: output, shape index: {}]  }
   0x1   :  { %10 = vsyncpa [#allocation3 + $0x1], 0 }
   0x2   :  { %11 = vsyncpa [#allocation4], 0 }
   0x3   :  { %13 = vsyncpa [#allocation4 + $0x1], 0  ;;  %s1087_s12 = smov 0   ;;  %s1089_s13 = smov 0  }
   0x4   :  { %s1091_s14 = smov 0   ;;  %s1093_s15 = smov 0  }
   0x5   :  { %s1095_s16 = smov 0   ;;  %s1097_s17 = smov 0  }
   0x6 LB: > { %s828_s18 = sadd.s32 4294967295, %s1060_s17   ;;  %s829_s19 = sadd.s32 4294967294, %s1060_s17   ;;  %s1060_s17 = sphi %s1097_s17, %s19_s17   ;;  %s1056_s16 = sphi %s1095_s16, %s1322_s16   ;;  %s1052_s15 = sphi %s1093_s15, %s1321_s15   ;;  %s1048_s14 = sphi %s1091_s14, %s1320_s14   ;;  %s1044_s13 = sphi %s1089_s13, %s1319_s13   ;;  %s1040_s12 = sphi %s1087_s12, %s1318_s12  }
   0x7   : > { %s38_s20 = sadd.s32 1, %s1056_s16  ;;  %s103_s21 = sadd.s32 1, %s1048_s14 }
   0x8   : > { %p40_p0 = scmp.ge.s32.totalorder %s38_s20, 2  ;;  %p110_p1 = scmp.ne.s32.totalorder %s1048_s14, %s1044_s13 }
   0x9   : > { %p111_p2 = scmp.eq.s32.totalorder %s1060_s17, 0  ;;  %p116_p3 = scmp.ne.s32.totalorder %s1044_s13, %s1040_s12 }
   0xa   : > { %s1324_s20 = smov (%p40_p0, %s38_s20), 0  ;;  %p117_p5 = scmp.eq.s32.totalorder %s828_s18, 0 }
   0xb   : > { %p1128_p4 = por %p111_p2, %p110_p1  ;;  %s98_s23 = ssub.s32 %s1056_s16, %s1324_s20 }
   0xc   : > { %p142_p6 = scmp.eq.s32.totalorder %s828_s18, 1  ;;  %p101_p7 = scmp.eq.s32.totalorder %s98_s23, 0 }
   0xd   : > { %p1134_p8 = por %p117_p5, %p116_p3  ;;  %p148_p10 = scmp.eq.s32.totalorder %s829_s19, 1 }
   0xe   : > { %p1138_p9 = por %p142_p6, %p110_p1  ;;  %p831_p12 = scmp.ge.s32.totalorder %s1060_s17, 2 }
   0xf   : > { %s1143_s26 = scalar_select %p101_p7, %s1048_s14, %s103_s21  }
  0x10   : > { %p1145_p11 = por %p148_p10, %p116_p3  ;;  %p889_p13 = scmp.lt.s32.totalorder %s1060_s17, 2 }
  0x11   : > { %s192_s28 = sand.u32 1, %s1048_s14   ;;  %s876_s30 = sshll.u32 %s1056_s16, 7 }
  0x12   : > { %s832_s29 = sshll.u32 %s192_s28, 7  ;;  %s204_s6 = scalar_lea.hbm %s1312_s2, %s876_s30 }
  0x13   : > { %s196_s7 = scalar_lea.vmem [#allocation2], %s832_s29  ;;  %s205_s9 = sshll.u32 %s204_s6, 4  ;;  %s206_s9 = int_to_ptr.hbm [resolvable:$true] %s205_s9 }
  0x14   : > { %s207_s8 = sshll.u32 %s196_s7, 4  ;;  %p882_p0 = pnand %p889_p13, %p1128_p4  ;;  %s208_s8 = int_to_ptr.vmem [resolvable:$true] %s207_s8 }
  0x15   : > { %p836_p1 = scmp.ge.s32.totalorder %s1060_s17, 1  ;;  %s193_s10 = scalar_lea.sflag [#allocation3], %s192_s28 }
  0x16   : > { %s1062_s11 = smov 128   ;;  %s1063_s18 = smov 8  }
  0x17   : > { %884 = dma.hbm_to_vmem [thread:$0]  (!%p882_p0), %s206_s9, 2048, %s208_s8, %s193_s10, %s1062_s11, %s1062_s11, %s1063_s18  }
  0x18   : > { %p215_p2 = scmp.lt.s32.totalorder %s1060_s17, 3 }
  0x1a   : > { %p216_p3 = pnand %p836_p1, %p215_p2 }
  0x1b   : > { %s1161_s19 = sand.u32 (!%p216_p3), 1, %s1044_s13  }
  0x1c   : > { %219 = sbr.rel (%p216_p3) target bundleno = 561 (0x231), region = 32  ;;  %s837_s21 = sshll.u32 (!%p216_p3), %s1161_s19, 7 }
  0x1d   : > { %s222_s23 = scalar_lea.sflag (!%p216_p3), [#allocation3], %s1161_s19  ;;  %s1165_s29 = scalar_lea.vmem (!%p216_p3), [#allocation2], %s837_s21 }
  0x21   : > { %1031 = dma.done.wait (%p1134_p8), %s222_s23, 2048  }
  0x22   : > { %1033 = vsyncadd (%p1134_p8), %s222_s23, 4294965248  ;;  %s839_s22 = sshll.u32 %s1052_s15, 1  ;;  %v291_v0 = vlaneseq  ;;  %v1064_v1 = vmov 0   ;;  %vm382_vm3 = vcmask 519168   ;;  %v1065_v31 = vmov 0.0   ;;  %v869_v33 = vld [vmem:[%s1165_s29 + $0x78] sm:$0xff] }
  0x23   : > { %944 = vset.pattern.permute.xlu0 %v1064_v1  ;;  %p266_p4 = scmp.lt.s32.totalorder %s839_s22, 3  ;;  %674 = vmatpush.msra.mxu1 %v869_v33  ;;  %v868_v35 = vld [vmem:[%s1165_s29 + $0x70] sm:$0xff]  ;;  %v867_v39 = vld [vmem:[%s1165_s29 + $0x68] sm:$0xff]  ;;  %v866_v44 = vld [vmem:[%s1165_s29 + $0x60] sm:$0xff]  ;;  %vm455_vm13 = vcmask 1041409   ;;  %vm457_vm14 = vcmask 1042434  }
  0x24   : > { %v304_v2 = vshrl.u32 %v291_v0, 7  ;;  %v1178_v5 = vand.u32 127, %v291_v0  ;;  %v865_v48 = vld [vmem:[%s1165_s29 + $0x58] sm:$0xff]  ;;  %v864_v52 = vld [vmem:[%s1165_s29 + $0x50] sm:$0xff]  ;;  %v863_v57 = vld [vmem:[%s1165_s29 + $0x48] sm:$0xff]  ;;  %s838_s8 = sshll.u32 %s1161_s19, 3 }
  0x25   : > { %s1326_s22 = smov (!%p266_p4, %s839_s22), 3  ;;  %675 = vmatpush.msra.mxu1 %v868_v35  ;;  %v862_v0 = vld [vmem:[%s1165_s29 + $0x40] sm:$0xff]  ;;  %s1253_s9 = scalar_lea.vmem [#allocation5], %s838_s8 }
  0x26   : > { %946 = vset.pattern.permute.xlu2 %v304_v2  ;;  %945 = vset.pattern.permute.xlu1 %v304_v2  ;;  %s840_s28 = sshll.u32 %s1326_s22, 3  ;;  %290 = vst [vmem:[%s1253_s9] sm:$0xff] %v1065_v31  ;;  %s1066_s10 = smov 64  }
  0x27   : > { %s281_s5 = scalar_lea.vmem %s1311_s1, %s840_s28  ;;  %s272_s7 = scalar_lea.vmem %s1310_s0, %s840_s28  ;;  %676 = vmatpush.msra.mxu1 %v867_v39 }
  0x28   : > { %v852_v3 = vld [vmem:[%s281_s5 + $0x8] sm:$0xff]  ;;  %v295_v4 = vld [vmem:[%s281_s5] sm:$0xff]  ;;  %s872_s11 = sshll.u32 %s1052_s15, 3  ;;  %s695_s28 = scalar_lea.sflag [#allocation4], %s1161_s19 }
  0x29   : > { %498 = vperm.xlu0 %944, %v852_v3   ;;  %v853_v6 = vld [vmem:[%s272_s7 + $0x8] sm:$0xff]  ;;  %v300_v12 = vld [vmem:[%s272_s7] sm:$0xff]  ;;  %677 = vmatpush.msra.mxu1 %v866_v44  ;;  %s707_s23 = scalar_lea.hbm %s1313_s3, %s872_s11  ;;  %s998_s24 = scalar_lea.hbm %s1313_s3, 16 }
  0x2a   : > { %s711_s22 = sshll.u32 %s707_s23, 4  ;;  %s712_s22 = int_to_ptr.hbm [resolvable:$true] %s711_s22 }
  0x2b   : > { %678 = vmatpush.msra.mxu1 %v865_v48  ;;  %s992_s30 = sshra.s32 %s712_s22, 4  ;;  %s993_s30 = int_to_ptr.hbm [resolvable:$true] %s992_s30 }
  0x2c   : > { %s994_s4 = scalar_lea.hbm %s993_s30, 8  ;;  %p999_p8 = scmp.lt.s32.totalorder %s993_s30, %s1313_s3 }
  0x2d   : > { %679 = vmatpush.msra.mxu1 %v864_v52  ;;  %v440_v52 = vld [vmem:[%s1165_s29 + $0x8] sm:$0xff]  ;;  %p995_p5 = scmp.ne.s32.totalorder %s993_s30, %s994_s4  ;;  %p1000_p10 = scmp.lt.s32.totalorder %s998_s24, %s994_s4 }
  0x2f   : > { %680 = vmatpush.msra.mxu1 %v863_v57  ;;  %p996_p6 = pnand %p995_p5, %p1138_p9  ;;  %p1001_p13 = por %p1000_p10, %p999_p8 }
  0x31   : > { %297 = vperm.xlu0 %944, %v295_v4   ;;  %681 = vmatpush.msra.mxu1 %v862_v0  ;;  %p997_p7 = pneg %p996_p6 }
  0x33   : > { %p1002_p0 = pnand %p1001_p13, %p997_p7 }
  0x39   : > { %947 = vset.pattern.permute.xlu0 %v304_v2 }
  0x9b   : > { %v499_v7 = vpop.permute.xlu0 %498 }
  0x9c   : > { %vm500_vm0 = vcmp.lt.s32.totalorder %v1178_v5, %v499_v7 }
  0x9d   : > { %v503_v8 = vsel %vm500_vm0, %v853_v6, 4294967295 }
  0x9e   : > { %v518_v9 = vperm.slane %v503_v8, 2  ;;  %v504_v10 = vperm.slane %v503_v8, 0  ;;  %v532_v11 = vperm.slane %v503_v8, 4  ;;  %v525_v15 = vperm.slane %v503_v8, 3 }
  0x9f   : > { %v511_v16 = vperm.slane %v503_v8, 1  ;;  %v546_v18 = vperm.slane %v503_v8, 6  ;;  %v539_v19 = vperm.slane %v503_v8, 5  ;;  %v553_v21 = vperm.slane %v503_v8, 7 }
  0xa0   : > { %523 = vperm.xlu2 %946, %v518_v9   ;;  %509 = vperm.xlu1 %945, %v504_v10  }
  0xa1   : > { %537 = vperm.xlu0 %947, %v532_v11   ;;  %v446_v11 = vld [vmem:[%s1165_s29 + $0x38] sm:$0xff] }
  0xa2   : > { %480 = vmatpush.msra.mxu0 %v446_v11 }
  0xa3   : > { %v298_v13 = vpop.permute.xlu0 %297 }
  0xa4   : > { %vm299_vm1 = vcmp.lt.s32.totalorder %v1178_v5, %v298_v13 }
  0xa5   : > { %v301_v14 = vsel %vm299_vm1, %v300_v12, 4294967295 }
  0xa6   : > { %v309_v17 = vperm.slane %v301_v14, 1  ;;  %v330_v20 = vperm.slane %v301_v14, 4  ;;  %v302_v22 = vperm.slane %v301_v14, 0  ;;  %v351_v23 = vperm.slane %v301_v14, 7 }
  0xa7   : > { %v316_v24 = vperm.slane %v301_v14, 2  ;;  %v323_v25 = vperm.slane %v301_v14, 3  ;;  %v337_v26 = vperm.slane %v301_v14, 5  ;;  %v344_v27 = vperm.slane %v301_v14, 6 }
  0xa8   : > { %530 = vperm.xlu2 %946, %v525_v15   ;;  %516 = vperm.xlu1 %945, %v511_v16  }
  0xa9   : > { %314 = vperm.xlu0 %947, %v309_v17  }
  0xb0   : > { %551 = vperm.xlu2 %946, %v546_v18   ;;  %544 = vperm.xlu1 %945, %v539_v19   ;;  %v445_v18 = vld [vmem:[%s1165_s29 + $0x30] sm:$0xff] }
  0xb1   : > { %335 = vperm.xlu0 %947, %v330_v20   ;;  %481 = vmatpush.msra.mxu0 %v445_v18 }
  0xb8   : > { %558 = vperm.xlu1 %945, %v553_v21   ;;  %307 = vperm.xlu2 %946, %v302_v22  }
  0xb9   : > { %356 = vperm.xlu0 %947, %v351_v23  }
  0xc0   : > { %321 = vperm.xlu1 %945, %v316_v24   ;;  %328 = vperm.xlu2 %946, %v323_v25  }
  0xc8   : > { %342 = vperm.xlu1 %945, %v337_v26   ;;  %349 = vperm.xlu2 %946, %v344_v27   ;;  %v444_v26 = vld [vmem:[%s1165_s29 + $0x28] sm:$0xff] }
  0xc9   : > { %482 = vmatpush.msra.mxu0 %v444_v26 }
  0xfa   : > { %v524_v28 = vpop.permute.xlu2 %523 }
  0xfb   : > { %vm562_vm2 = vcmp.eq.s32.totalorder %v524_v28, %v1178_v5 }
  0xfc   : > { %v856_v32 = vsel %vm562_vm2, 1.0, %v1065_v31 }
  0xfd   : > { %v598_v34 = vsel %vm382_vm3, %v856_v32, 0.0 }
  0xfe   : > { %v599_v40 = vrot.slane %v598_v34, 4 }
 0x100   : > { %v600_v49 = vadd.f32 %v599_v40, %v598_v34  ;;  %v443_v34 = vld [vmem:[%s1165_s29 + $0x20] sm:$0xff] }
 0x101   : > { %483 = vmatpush.msra.mxu0 %v443_v34 }
 0x102   : > { %v531_v29 = vpop.permute.xlu2 %530  ;;  %v601_v58 = vrot.slane %v600_v49, 2 }
 0x103   : > { %vm563_vm4 = vcmp.eq.s32.totalorder %v531_v29, %v1178_v5 }
 0x104   : > { %v857_v37 = vsel %vm563_vm4, 1.0, %v1065_v31  ;;  %v602_v6 = vadd.f32 %v601_v58, %v600_v49  ;;  %vm459_vm4 = vcmask 1043459  }
 0x105   : > { %v605_v45 = vsel %vm382_vm3, %v857_v37, 0.0 }
 0x106   : > { %v606_v50 = vrot.slane %v605_v45, 4  ;;  %v603_v19 = vrot.slane %v602_v6, 1 }
 0x108   : > { %v607_v61 = vadd.f32 %v606_v50, %v605_v45  ;;  %v604_v39 = vadd.f32 %v603_v19, %v602_v6 }
 0x10a   : > { %v552_v30 = vpop.permute.xlu2 %551  ;;  %v608_v8 = vrot.slane %v607_v61, 2 }
 0x10b   : > { %vm566_vm6 = vcmp.eq.s32.totalorder %v552_v30, %v1178_v5 }
 0x10c   : > { %v860_v47 = vsel %vm566_vm6, 1.0, %v1065_v31  ;;  %v609_v23 = vadd.f32 %v608_v8, %v607_v61  ;;  %vm463_vm6 = vcmask 1045509  }
 0x10d   : > { %v626_v53 = vsel %vm382_vm3, %v860_v47, 0.0 }
 0x10e   : > { %v627_v62 = vrot.slane %v626_v53, 4  ;;  %v610_v40 = vrot.slane %v609_v23, 1 }
 0x110   : > { %v628_v9 = vadd.f32 %v627_v62, %v626_v53 }
 0x112   : > { %v510_v36 = vpop.permute.xlu1 %509  ;;  %v308_v43 = vpop.permute.xlu2 %307  ;;  %v629_v24 = vrot.slane %v628_v9, 2 }
 0x113   : > { %vm560_vm5 = vcmp.eq.s32.totalorder %v510_v36, %v1178_v5  ;;  %v538_v38 = vpop.permute.xlu0 %537  ;;  %vm358_vm9 = vcmp.eq.s32.totalorder %v308_v43, %v1178_v5  ;;  %v441_v43 = vld [vmem:[%s1165_s29 + $0x10] sm:$0xff] }
 0x114   : > { %v854_v41 = vsel %vm560_vm5, 1.0, %v1065_v31  ;;  %vm564_vm7 = vcmp.eq.s32.totalorder %v538_v38, %v1178_v5  ;;  %v843_v10 = vsel %vm358_vm9, 1.0, %v1065_v31  ;;  %v442_v38 = vld [vmem:[%s1165_s29 + $0x18] sm:$0xff]  ;;  %v630_v44 = vadd.f32 %v629_v24, %v628_v9 }
 0x115   : > { %v584_v42 = vsel %vm382_vm3, %v854_v41, 0.0  ;;  %v858_v51 = vsel %vm564_vm7, 1.0, %v1065_v31  ;;  %v383_v20 = vsel %vm382_vm3, %v843_v10, 0.0  ;;  %484 = vmatpush.msra.mxu0 %v442_v38  ;;  %vm461_vm5 = vcmask 1044484  }
 0x116   : > { %v585_v46 = vrot.slane %v584_v42, 4  ;;  %v612_v59 = vsel %vm382_vm3, %v858_v51, 0.0  ;;  %v384_v32 = vrot.slane %v383_v20, 4  ;;  %vm467_vm9 = vcmask 1047559  }
 0x117   : > { %v613_v3 = vrot.slane %v612_v59, 4  ;;  %485 = vmatpush.msra.mxu0 %v441_v43 }
 0x118   : > { %v586_v54 = vadd.f32 %v585_v46, %v584_v42  ;;  %v385_v48 = vadd.f32 %v384_v32, %v383_v20 }
 0x119   : > { %v614_v15 = vadd.f32 %v613_v3, %v612_v59  ;;  %v439_v59 = vld [vmem:[%s1165_s29] sm:$0xff]  ;;  %486 = vmatpush.msra.mxu0 %v440_v52  ;;  %s709_s29 = sshll.u32 %s1253_s9, 4  ;;  %s710_s29 = int_to_ptr.vmem [resolvable:$true] %s709_s29 }
 0x11a   : > { %v517_v55 = vpop.permute.xlu1 %516  ;;  %v587_v1 = vrot.slane %v586_v54, 2  ;;  %v329_v4 = vpop.permute.xlu2 %328  ;;  %v386_v8 = vrot.slane %v385_v48, 2 }
 0x11b   : > { %vm561_vm8 = vcmp.eq.s32.totalorder %v517_v55, %v1178_v5  ;;  %v315_v56 = vpop.permute.xlu0 %314  ;;  %vm361_vm12 = vcmp.eq.s32.totalorder %v329_v4, %v1178_v5  ;;  %v615_v33 = vrot.slane %v614_v15, 2  ;;  %487 = vmatpush.msra.mxu0 %v439_v59 }
 0x11c   : > { %v855_v60 = vsel %vm561_vm8, 1.0, %v1065_v31  ;;  %vm359_vm10 = vcmp.eq.s32.totalorder %v315_v56, %v1178_v5  ;;  %v588_v12 = vadd.f32 %v587_v1, %v586_v54  ;;  %v846_v36 = vsel %vm361_vm12, 1.0, %v1065_v31 }
 0x11d   : > { %v591_v63 = vsel %vm382_vm3, %v855_v60, 0.0  ;;  %v844_v16 = vsel %vm359_vm10, 1.0, %v1065_v31  ;;  %v616_v49 = vadd.f32 %v615_v33, %v614_v15  ;;  %v404_v50 = vsel %vm382_vm3, %v846_v36, 0.0 }
 0x11e   : > { %v592_v2 = vrot.slane %v591_v63, 4  ;;  %v589_v27 = vrot.slane %v588_v12, 1  ;;  %v390_v29 = vsel %vm382_vm3, %v844_v16, 0.0  ;;  %v611_v60 = vadd.f32 %v610_v40, %v609_v23 }
 0x11f   : > { %v391_v41 = vrot.slane %v390_v29, 4  ;;  %vm465_vm8 = vcmask 1046534   ;;  %vm469_vm10 = vcmask 523264  }
 0x120   : > { %v593_v7 = vadd.f32 %v592_v2, %v591_v63  ;;  %v590_v45 = vadd.f32 %v589_v27, %v588_v12  ;;  %v617_v63 = vrot.slane %v616_v49, 1  ;;  %v405_v2 = vrot.slane %v404_v50, 4 }
 0x121   : > { %v392_v56 = vadd.f32 %v391_v41, %v390_v29 }
 0x122   : > { %v594_v13 = vrot.slane %v593_v7, 2  ;;  %v545_v14 = vpop.permute.xlu1 %544  ;;  %v350_v42 = vpop.permute.xlu2 %349  ;;  %v618_v15 = vadd.f32 %v617_v63, %v616_v49  ;;  %v406_v18 = vadd.f32 %v405_v2, %v404_v50 }
 0x123   : > { %vm565_vm11 = vcmp.eq.s32.totalorder %v545_v14, %v1178_v5  ;;  %v336_v17 = vpop.permute.xlu0 %335  ;;  %vm364_vm1 = vcmp.eq.s32.totalorder %v350_v42, %v1178_v5  ;;  %v393_v9 = vrot.slane %v392_v56, 2 }
 0x124   : > { %v595_v21 = vadd.f32 %v594_v13, %v593_v7  ;;  %v859_v22 = vsel %vm565_vm11, 1.0, %v1065_v31  ;;  %vm362_vm15 = vcmp.eq.s32.totalorder %v336_v17, %v1178_v5  ;;  %v849_v0 = vsel %vm364_vm1, 1.0, %v1065_v31 }
 0x125   : > { %v619_v25 = vsel %vm382_vm3, %v859_v22, 0.0  ;;  %v847_v57 = vsel %vm362_vm15, 1.0, %v1065_v31  ;;  %v631_v7 = vrot.slane %v630_v44, 1  ;;  %v425_v11 = vsel %vm382_vm3, %v849_v0, 0.0 }
 0x126   : > { %v596_v28 = vrot.slane %v595_v21, 1  ;;  %v620_v30 = vrot.slane %v619_v25, 4  ;;  %v411_v3 = vsel %vm382_vm3, %v847_v57, 0.0  ;;  %v426_v22 = vrot.slane %v425_v11, 4 }
 0x127   : > { %v412_v16 = vrot.slane %v411_v3, 4  ;;  %v632_v29 = vadd.f32 %v631_v7, %v630_v44  ;;  %v407_v33 = vrot.slane %v406_v18, 2 }
 0x128   : > { %v597_v35 = vadd.f32 %v596_v28, %v595_v21  ;;  %v621_v37 = vadd.f32 %v620_v30, %v619_v25  ;;  %v394_v21 = vadd.f32 %v393_v9, %v392_v56  ;;  %v387_v30 = vadd.f32 %v386_v8, %v385_v48 }
 0x129   : > { %v413_v32 = vadd.f32 %v412_v16, %v411_v3  ;;  %v427_v36 = vadd.f32 %v426_v22, %v425_v11 }
 0x12a   : > { %v622_v46 = vrot.slane %v621_v37, 2  ;;  %v559_v47 = vpop.permute.xlu1 %558  ;;  %v657_v53 = vsel %vm455_vm13, %v597_v35, %v590_v45  ;;  %v395_v38 = vrot.slane %v394_v21, 1  ;;  %v388_v44 = vrot.slane %v387_v30, 1 }
 0x12b   : > { %vm567_vm0 = vcmp.eq.s32.totalorder %v559_v47, %v1178_v5  ;;  %v357_v51 = vpop.permute.xlu0 %356  ;;  %v658_v1 = vsel %vm457_vm14, %v604_v39, %v657_v53  ;;  %v414_v43 = vrot.slane %v413_v32, 2  ;;  %v408_v45 = vadd.f32 %v407_v33, %v406_v18 }
 0x12c   : > { %v623_v54 = vadd.f32 %v622_v46, %v621_v37  ;;  %v861_v55 = vsel %vm567_vm0, 1.0, %v1065_v31  ;;  %vm365_vm2 = vcmp.eq.s32.totalorder %v357_v51, %v1178_v5  ;;  %v659_v14 = vsel %vm459_vm4, %v611_v60, %v658_v1 }
 0x12d   : > { %v633_v58 = vsel %vm382_vm3, %v861_v55, 0.0  ;;  %v850_v6 = vsel %vm365_vm2, 1.0, %v1065_v31  ;;  %v660_v24 = vsel %vm461_vm5, %v618_v15, %v659_v14  ;;  %v428_v48 = vrot.slane %v427_v36, 2 }
 0x12e   : > { %v624_v61 = vrot.slane %v623_v54, 1  ;;  %v634_v62 = vrot.slane %v633_v58, 4  ;;  %v432_v17 = vsel %vm382_vm3, %v850_v6, 0.0  ;;  %v396_v50 = vadd.f32 %v395_v38, %v394_v21 }
 0x12f   : > { %v433_v26 = vrot.slane %v432_v17, 4  ;;  %v409_v55 = vrot.slane %v408_v45, 1 }
 0x130   : > { %v635_v4 = vadd.f32 %v634_v62, %v633_v58  ;;  %v625_v10 = vadd.f32 %v624_v61, %v623_v54  ;;  %v389_v54 = vadd.f32 %v388_v44, %v387_v30  ;;  %v429_v58 = vadd.f32 %v428_v48, %v427_v36 }
 0x131   : > { %v434_v39 = vadd.f32 %v433_v26, %v432_v17  ;;  %v410_v63 = vadd.f32 %v409_v55, %v408_v45 }
 0x132   : > { %v636_v12 = vrot.slane %v635_v4, 2  ;;  %v322_v13 = vpop.permute.xlu1 %321  ;;  %v661_v28 = vsel %vm463_vm6, %v625_v10, %v660_v24  ;;  %v456_v59 = vsel %vm455_vm13, %v396_v50, %v389_v54  ;;  %v430_v1 = vrot.slane %v429_v58, 1 }
 0x133   : > { %vm360_vm7 = vcmp.eq.s32.totalorder %v322_v13, %v1178_v5  ;;  %v662_v37 = vsel %vm465_vm8, %v632_v29, %v661_v28  ;;  %v435_v51 = vrot.slane %v434_v39, 2 }
 0x134   : > { %v637_v19 = vadd.f32 %v636_v12, %v635_v4  ;;  %v845_v20 = vsel %vm360_vm7, 1.0, %v1065_v31  ;;  %v431_v8 = vadd.f32 %v430_v1, %v429_v58 }
 0x135   : > { %v397_v23 = vsel %vm382_vm3, %v845_v20, 0.0  ;;  %v436_v60 = vadd.f32 %v435_v51, %v434_v39 }
 0x136   : > { %v638_v25 = vrot.slane %v637_v19, 1  ;;  %v398_v27 = vrot.slane %v397_v23, 4 }
 0x137   : > { %v437_v2 = vrot.slane %v436_v60, 1 }
 0x138   : > { %v399_v34 = vadd.f32 %v398_v27, %v397_v23  ;;  %v639_v35 = vadd.f32 %v638_v25, %v637_v19 }
 0x139   : > { %v438_v10 = vadd.f32 %v437_v2, %v436_v60 }
 0x13a   : > { %v400_v40 = vrot.slane %v399_v34, 2  ;;  %v343_v41 = vpop.permute.xlu1 %342  ;;  %v663_v42 = vsel %vm467_vm9, %v639_v35, %v662_v37 }
 0x13b   : > { %vm363_vm11 = vcmp.eq.s32.totalorder %v343_v41, %v1178_v5  ;;  %870 = vmatmul.msk.f32.vlgmr.msra.gmra.mxu1 %vm469_vm10, %v663_v42  ;;  %v415_v5 = vadd.f32 %v414_v43, %v413_v32 }
 0x13c   : > { %v401_v46 = vadd.f32 %v400_v40, %v399_v34  ;;  %v848_v47 = vsel %vm363_vm11, 1.0, %v1065_v31 }
 0x13d   : > { %v418_v49 = vsel %vm382_vm3, %v848_v47, 0.0  ;;  %v416_v62 = vrot.slane %v415_v5, 1  ;;  %vm692_vm3 = vcmask 1048064  }
 0x13e   : > { %v402_v52 = vrot.slane %v401_v46, 1  ;;  %v419_v53 = vrot.slane %v418_v49, 4 }
 0x13f   : > { %v417_v6 = vadd.f32 %v416_v62, %v415_v5 }
 0x140   : > { %v403_v56 = vadd.f32 %v402_v52, %v401_v46  ;;  %v420_v57 = vadd.f32 %v419_v53, %v418_v49 }
 0x142   : > { %v421_v61 = vrot.slane %v420_v57, 2  ;;  %v458_v31 = vsel %vm457_vm14, %v403_v56, %v456_v59 }
 0x143   : > { %v460_v4 = vsel %vm459_vm4, %v410_v63, %v458_v31 }
 0x144   : > { %v422_v0 = vadd.f32 %v421_v61, %v420_v57  ;;  %v462_v9 = vsel %vm461_vm5, %v417_v6, %v460_v4 }
 0x146   : > { %v423_v3 = vrot.slane %v422_v0, 1 }
 0x148   : > { %v424_v7 = vadd.f32 %v423_v3, %v422_v0 }
 0x14a   : > { %v464_v11 = vsel %vm463_vm6, %v424_v7, %v462_v9 }
 0x14b   : > { %v466_v12 = vsel %vm465_vm8, %v431_v8, %v464_v11 }
 0x14c   : > { %v468_v13 = vsel %vm467_vm9, %v438_v10, %v466_v12 }
 0x14d   : > { %851 = vmatmul.msk.f32.vlgmr.msra.gmra.mxu0 %vm469_vm10, %v468_v13 }
 0x1b8   : > { %v683_v14 = vpop.f32.mrf.mxu1 }
 0x1b9   : > { %688 = vrot.lane.b32.xlu1 %v683_v14, %s1066_s10 }
 0x1ca   : > { %v489_v15 = vpop.f32.mrf.mxu0 }
 0x1cb   : > { %494 = vst.msk [vmem:[%s1253_s9] sm:$0xff] %vm469_vm10, %v489_v15 }
 0x1d2   : > { %v686_v17 = vld [vmem:[%s1253_s9] sm:$0xff] }
 0x22b   : > { %v689_v16 = vpop.permute.xlu1 %688 }
 0x22c   : > { %v691_v18 = vadd.f32 %v689_v16, %v686_v17 }
 0x22e   : > { %693 = vst.msk [vmem:[%s1253_s9] sm:$0xff] %vm692_vm3, %v691_v18 }
 0x22f   : > { %1005 = shalt.err (!%p1002_p0)
}
 0x230   : > { %879 = dma.vmem_to_hbm [thread:$0]  (%p1138_p9), %s710_s29, 128, %s712_s22, %s695_s28  }
 0x231 PF: > { %s723_s19 = sand.u32 1, %s1040_s12   ;;  %p886_p1 = pnand %p831_p12, %p1145_p11 }
 0x232   : > { %s724_s8 = scalar_lea.sflag [#allocation4], %s723_s19 }
 0x233   : > { %p887_p2 = pneg %p886_p1 }
 0x235   : > { %1035 = dma.done.wait (%p887_p2), %s724_s8, 128  }
 0x236   : > { %1037 = vsyncadd (%p887_p2), %s724_s8, 4294967168  ;;  %s19_s17 = sadd.s32 1, %s1060_s17   ;;  %s1318_s12 = smov %s1044_s13 }
 0x237   : > { %p16_p3 = scmp.ge.s32.totalorder %s19_s17, 4   ;;  %s1319_s13 = smov %s1048_s14 }
 0x238   : > { %s1320_s14 = smov %s1143_s26  ;;  %s1321_s15 = smov %s1056_s16 }
 0x239   : > { %s1322_s16 = smov %s1324_s20  ;;  %18 = sbr.rel (!%p16_p3) target bundleno = 6 (0x6), region = 90 }
 0x23e   :  { %730 = vsyncpa [#allocation3], 1 }
 0x23f   :  { %732 = vsyncpa [#allocation3 + $0x1], 1 }
 0x240   :  { %733 = vsyncpa [#allocation4], 1 }
 0x241   :  { %735 = vsyncpa [#allocation4 + $0x1], 1 }

</bundles_post_ra>
